<compile_context>
chip_gen: v6e
topology: v6e:2x2x1
jax: 0.10.0
libtpu: 0.0.40
codegen_flags: <defaults>
</compile_context>

<pallas_src>
import jax
import jax.numpy as jnp
from jax.experimental import pallas as pl
from jax.experimental.pallas import tpu as pltpu

_MIB = 1024 * 1024


# --------------------------------------------------------------------------
# Kernels
# --------------------------------------------------------------------------

def _se_kernel(x_ref, w1_ref, w2_ref, o_ref):
    # x_ref / o_ref: (bt, C, HW) lane-dense   w1_ref: (C, Hd)   w2_ref: (Hd, C)
    x = x_ref[...]

    # 'b c hw -> b c' global average pool over the lane-dense spatial axis,
    # accumulated in f32 without materializing an f32 copy of the slab.
    pooled = jnp.mean(x, axis=-1, dtype=jnp.float32)                  # (bt, C)

    # Linear(dim -> hidden, no bias) + SiLU. Feed the MXU in the weight dtype
    # (native bf16 path for bf16 weights); accumulate in f32.
    w_dtype = w1_ref.dtype
    h = jnp.dot(pooled.astype(w_dtype), w1_ref[...],
                preferred_element_type=jnp.float32)                   # (bt, Hd)
    h = h * jax.nn.sigmoid(h)

    # Linear(hidden -> dim, no bias) + Sigmoid
    g = jax.nn.sigmoid(
        jnp.dot(h.astype(w_dtype), w2_ref[...],
                preferred_element_type=jnp.float32))                  # (bt, C)

    # 'b c -> b c 1' broadcast along the lane axis; gate in the input dtype so
    # bf16 inputs stay bf16 (halves vreg/VMEM traffic on v6e/v7x).
    o_ref[...] = (x * g.astype(x.dtype)[:, :, None]).astype(o_ref.dtype)


def _pool_kernel(x_ref, p_ref):
    # x_ref: (1, ct, HW)  ->  p_ref: (1, ct, 1) f32 mean over the full HW axis.
    p_ref[...] = jnp.mean(x_ref[...], axis=-1, keepdims=True, dtype=jnp.float32)


def _gate_kernel(x_ref, g_ref, o_ref):
    # x_ref / o_ref: (1, ct, HW)   g_ref: (1, ct, 1) f32 gate, lane-broadcast.
    x = x_ref[...]
    o_ref[...] = (x * g_ref[...].astype(x.dtype)).astype(o_ref.dtype)


# --------------------------------------------------------------------------
# Hardware / VMEM planning
# --------------------------------------------------------------------------

def _hw_info():
    """Return (vmem_capacity_bytes, num_tensorcores) with conservative fallbacks."""
    vmem_cap = None
    try:
        vmem_cap = int(pltpu.get_tpu_info().vmem_capacity_bytes)
    except Exception:
        vmem_cap = None
    kind = ""
    try:
        kind = jax.devices()[0].device_kind.lower()
    except Exception:
        kind = ""
    is_v7 = ("v7" in kind) or ("7x" in kind)
    if vmem_cap is None:
        # Unknown: assume the smallest VMEM part (v7x, 64 MiB) to stay safe.
        vmem_cap = 64 * _MIB if (is_v7 or not kind) else 128 * _MIB
    num_cores = 2 if is_v7 else 1   # v5e/v6e: 1 TC per chip; v7x: 2 TCs.
    return vmem_cap, num_cores


def _vmem_plan(vmem_cap, override=None):
    """Return (block_budget_bytes, vmem_limit_bytes)."""
    if override is not None:
        budget = int(override)
    elif vmem_cap >= 100 * _MIB:       # v5e / v6e: 128 MiB physical
        budget = 56 * _MIB
    else:                              # v7x: 64 MiB physical
        budget = 36 * _MIB
    # vmem_limit must cover the double-buffered blocks (= budget) plus weights
    # and compiler-internal scratch, and stay below physical capacity.
    limit = max(budget + 8 * _MIB, 32 * _MIB)
    limit = min(limit, vmem_cap - 16 * _MIB)
    limit = max(limit, 16 * _MIB)
    return budget, limit


# --------------------------------------------------------------------------
# Two-pass fallback: pool kernel -> XLA gate math -> gating kernel
# --------------------------------------------------------------------------

def _squeeze_excitation_two_pass(x2, w1, w2, budget, limit, num_cores):
    B, C, HW = x2.shape
    itemsize = jnp.dtype(x2.dtype).itemsize

    # Channel tile: largest multiple of 8 whose (1, ct, HW) in+out blocks
    # (double-buffered ~= 4x) fit the budget.
    max_ct = (budget // (4 * HW * itemsize) // 8) * 8
    ct = min(C, max(8, max_ct))
    # On 2-TC parts with tiny batch, shrink ct so both cores get grid steps.
    if num_cores >= 2 and B * ((C + ct - 1) // ct) < num_cores:
        ct = min(ct, max(8, ((C // num_cores) // 8) * 8))
    # TODO(synk): if even ct=8 exceeds the budget (extremely large H*W) an
    # HW-tiled accumulating pool pass is needed; not required for realistic
    # MaxViT feature maps.
    grid = (B, (C + ct - 1) // ct)

    cparams = pltpu.CompilerParams(
        dimension_semantics=("parallel", "parallel"),
        vmem_limit_bytes=limit,
    )

    pool_cost = pl.CostEstimate(
        flops=B * C * HW,
        transcendentals=0,
        bytes_accessed=B * C * HW * itemsize + B * C * 4,
    )
    pooled = pl.pallas_call(
        _pool_kernel,
        out_shape=jax.ShapeDtypeStruct((B, C, 1), jnp.float32),
        grid_spec=pltpu.PrefetchScalarGridSpec(
            num_scalar_prefetch=0,
            grid=grid,
            in_specs=[pl.BlockSpec((1, ct, HW), lambda b, c: (b, c, 0))],
            out_specs=pl.BlockSpec((1, ct, 1), lambda b, c: (b, c, 0)),
        ),
        compiler_params=cparams,
        cost_estimate=pool_cost,
    )(x2)

    # Tiny (B, C) gate math in plain XLA.
    pooled2 = pooled[:, :, 0]                                    # (B, C) f32
    w_dtype = w1.dtype
    h = jnp.dot(pooled2.astype(w_dtype), w1, preferred_element_type=jnp.float32)
    h = h * jax.nn.sigmoid(h)
    g = jax.nn.sigmoid(
        jnp.dot(h.astype(w_dtype), w2, preferred_element_type=jnp.float32))
    g = g.astype(jnp.float32)[:, :, None]                        # (B, C, 1)

    gate_cost = pl.CostEstimate(
        flops=B * C * HW,
        transcendentals=0,
        bytes_accessed=2 * B * C * HW * itemsize + B * C * 4,
    )
    out = pl.pallas_call(
        _gate_kernel,
        out_shape=jax.ShapeDtypeStruct((B, C, HW), x2.dtype),
        grid_spec=pltpu.PrefetchScalarGridSpec(
            num_scalar_prefetch=0,
            grid=grid,
            in_specs=[
                pl.BlockSpec((1, ct, HW), lambda b, c: (b, c, 0)),
                pl.BlockSpec((1, ct, 1), lambda b, c: (b, c, 0)),
            ],
            out_specs=pl.BlockSpec((1, ct, HW), lambda b, c: (b, c, 0)),
        ),
        compiler_params=cparams,
        cost_estimate=gate_cost,
    )(x2, g)
    return out


# --------------------------------------------------------------------------
# Public wrapper
# --------------------------------------------------------------------------

def squeeze_excitation(x, w1, w2, *, vmem_budget_bytes=None):
    """x: (B, C, H, W); w1: (C, hidden); w2: (hidden, C). Returns (B, C, H, W)."""
    B, C, H, W = x.shape
    hidden = w1.shape[1]
    assert w1.shape == (C, hidden) and w2.shape == (hidden, C)

    HW = H * W
    # Free reshape: NCHW is HBM-contiguous over (H, W) -> lane-dense last dim.
    x2 = x.reshape(B, C, HW)

    vmem_cap, num_cores = _hw_info()
    budget, limit = _vmem_plan(vmem_cap, vmem_budget_bytes)

    itemsize = jnp.dtype(x.dtype).itemsize
    per_batch_bytes = C * HW * itemsize

    # Two-pass path when (a) the per-batch slab (double-buffered in+out) cannot
    # fit the single-pass VMEM budget, or (b) batch is too small to feed both
    # TensorCores on a 2-TC part and the slab is big enough to be HBM-bound.
    slab_too_big = 4 * per_batch_bytes > budget
    small_batch_split = (num_cores >= 2 and B < num_cores
                         and C >= 16 and per_batch_bytes >= 2 * _MIB)
    if slab_too_big or small_batch_split:
        out = _squeeze_excitation_two_pass(x2, w1, w2, budget, limit, num_cores)
        return out.reshape(B, C, H, W)

    # ---- single-pass path: batch-tiled (bt, C, HW) blocks ------------------
    # Live VMEM ~= 4 * bt * per_batch_bytes (input + output, double-buffered).
    max_bt = max(1, budget // (4 * per_batch_bytes))
    bt = min(B, max_bt)
    # Only cap for multi-TC parts so the "parallel" batch axis shards across
    # TensorCores; on single-TC v5e/v6e use the largest VMEM-fitting tile.
    if num_cores >= 2 and B >= num_cores:
        bt = min(bt, max(1, B // num_cores))
    grid_b = pl.cdiv(B, bt)  # non-divisor tiles OK: ragged rows never stored

    w_itemsize = jnp.dtype(w1.dtype).itemsize
    cost = pl.CostEstimate(
        flops=2 * B * C * HW + 4 * B * C * hidden,
        transcendentals=B * (hidden + C),
        bytes_accessed=2 * B * C * HW * itemsize + 2 * C * hidden * w_itemsize,
    )

    # Weight BlockSpecs are grid-invariant (index_map constant); left at the
    # default pipeline mode since they are only C*hidden elements.
    out = pl.pallas_call(
        _se_kernel,
        out_shape=jax.ShapeDtypeStruct((B, C, HW), x.dtype),
        grid_spec=pltpu.PrefetchScalarGridSpec(
            num_scalar_prefetch=0,
            grid=(grid_b,),
            in_specs=[
                pl.BlockSpec((bt, C, HW), lambda b: (b, 0, 0)),
                pl.BlockSpec((C, hidden), lambda b: (0, 0)),
                pl.BlockSpec((hidden, C), lambda b: (0, 0)),
            ],
            out_specs=pl.BlockSpec((bt, C, HW), lambda b: (b, 0, 0)),
        ),
        compiler_params=pltpu.CompilerParams(
            dimension_semantics=("parallel",),
            vmem_limit_bytes=limit,
        ),
        cost_estimate=cost,
    )(x2, w1, w2)

    return out.reshape(B, C, H, W)


def squeeze_excitation_ref(x, w1, w2):
    pooled = jnp.mean(x, axis=(2, 3))
    h = pooled @ w1
    h = h * jax.nn.sigmoid(h)
    g = jax.nn.sigmoid(h @ w2)
    return x * g[:, :, None, None]


if __name__ == "__main__":
    # Module config: dim = C, shrinkage_rate = 0.25 -> hidden = int(C * 0.25)
    B, C, H, W = 2, 16, 16, 16
    hidden = int(C * 0.25)  # 4

    key = jax.random.PRNGKey(0)
    kx, k1, k2, kx3 = jax.random.split(key, 4)

    x = jax.random.normal(kx, (B, C, H, W), dtype=jnp.float32)

    # nn.Linear(dim, hidden, bias=False) has weight (hidden, dim); y = x @ W.T.
    # Store pre-transposed matrices so the kernel does plain row-major matmuls.
    w1_t = jax.random.normal(k1, (hidden, C), dtype=jnp.float32) * (1.0 / jnp.sqrt(C))
    w2_t = jax.random.normal(k2, (C, hidden), dtype=jnp.float32) * (1.0 / jnp.sqrt(hidden))
    w1 = w1_t.T  # (C, hidden)
    w2 = w2_t.T  # (hidden, C)

    ref = squeeze_excitation_ref(x, w1, w2)

    # 1) Default single-pass path (auto VMEM plan).
    out = jax.block_until_ready(squeeze_excitation(x, w1, w2))
    assert out.shape == (B, C, H, W)
    assert jnp.allclose(out, ref, atol=1e-5, rtol=1e-5)

    # 2) Force the C-tiled two-pass fallback (tiny budget) and check it matches.
    out2 = jax.block_until_ready(
        squeeze_excitation(x, w1, w2, vmem_budget_bytes=32 * 1024))
    assert jnp.allclose(out2, ref, atol=1e-5, rtol=1e-5)

    # 3) Non-divisor batch tiling (cdiv grid with a masked partial final block).
    x3 = jax.random.normal(kx3, (3, C, H, W), dtype=jnp.float32)
    ref3 = squeeze_excitation_ref(x3, w1, w2)
    out3 = jax.block_until_ready(
        squeeze_excitation(x3, w1, w2, vmem_budget_bytes=128 * 1024))
    assert jnp.allclose(out3, ref3, atol=1e-5, rtol=1e-5)

    print("KERNEL_OK")
</pallas_src>

<mosaic_0001>
module attributes {stable_mosaic.version = 11 : i64} {
  func.func @_se_kernel(%arg0: i32, %arg1: memref<2x16x256xf32, #tpu.memory_space<vmem>>, %arg2: memref<16x4xf32, #tpu.memory_space<vmem>>, %arg3: memref<4x16xf32, #tpu.memory_space<vmem>>, %arg4: memref<2x16x256xf32, #tpu.memory_space<vmem>>) attributes {dimension_semantics = [#tpu.dimension_semantics<parallel>], iteration_bounds = array<i64: 1>, scalar_prefetch = 0 : i64, scratch_operands = 0 : i64, tpu.core_type = #tpu.core_type<tc>, window_params = [{transform_indices = @transform_0, window_bounds = array<i64: 2, 16, 256>}, {pipeline_mode = #tpu.pipeline_mode<synchronous>, transform_indices = @transform_1, window_bounds = array<i64: 16, 4>}, {pipeline_mode = #tpu.pipeline_mode<synchronous>, transform_indices = @transform_2, window_bounds = array<i64: 4, 16>}, {transform_indices = @transform_3, window_bounds = array<i64: 2, 16, 256>}]} {
    %c0 = arith.constant 0 : index
    %c0_0 = arith.constant 0 : index
    %c0_1 = arith.constant 0 : index
    %0 = vector.load %arg1[%c0, %c0_0, %c0_1] : memref<2x16x256xf32, #tpu.memory_space<vmem>>, vector<2x16x256xf32>
    %cst = arith.constant dense<0.000000e+00> : vector<2x16xf32>
    %1 = vector.multi_reduction <add>, %0, %cst [2] : vector<2x16x256xf32> to vector<2x16xf32>
    %cst_2 = arith.constant 2.560000e+02 : f32
    %2 = vector.broadcast %cst_2 : f32 to vector<2x16xf32>
    %3 = arith.divf %1, %2 : vector<2x16xf32>
    %c0_3 = arith.constant 0 : index
    %c0_4 = arith.constant 0 : index
    %4 = vector.load %arg2[%c0_3, %c0_4] : memref<16x4xf32, #tpu.memory_space<vmem>>, vector<16x4xf32>
    %cst_5 = arith.constant dense<0.000000e+00> : vector<2x4xf32>
    %5 = tpu.matmul %3, %4, %cst_5 {dimension_numbers = #tpu.dot_dimension_numbers<[1], [0], [0], [1], [0, 0, 1, 1], [], []>} : vector<2x16xf32>, vector<16x4xf32>, vector<2x4xf32> -> vector<2x4xf32>
    %6 = arith.negf %5 : vector<2x4xf32>
    %7 = math.exp %6 : vector<2x4xf32>
    %cst_6 = arith.constant 1.000000e+00 : f32
    %8 = vector.broadcast %cst_6 : f32 to vector<2x4xf32>
    %9 = arith.addf %8, %7 : vector<2x4xf32>
    %10 = arith.divf %8, %9 : vector<2x4xf32>
    %11 = arith.mulf %5, %10 : vector<2x4xf32>
    %c0_7 = arith.constant 0 : index
    %c0_8 = arith.constant 0 : index
    %12 = vector.load %arg3[%c0_7, %c0_8] : memref<4x16xf32, #tpu.memory_space<vmem>>, vector<4x16xf32>
    %cst_9 = arith.constant dense<0.000000e+00> : vector<2x16xf32>
    %13 = tpu.matmul %11, %12, %cst_9 {dimension_numbers = #tpu.dot_dimension_numbers<[1], [0], [0], [1], [0, 0, 1, 1], [], []>} : vector<2x4xf32>, vector<4x16xf32>, vector<2x16xf32> -> vector<2x16xf32>
    %14 = arith.negf %13 : vector<2x16xf32>
    %15 = math.exp %14 : vector<2x16xf32>
    %cst_10 = arith.constant 1.000000e+00 : f32
    %16 = vector.broadcast %cst_10 : f32 to vector<2x16xf32>
    %17 = arith.addf %16, %15 : vector<2x16xf32>
    %18 = arith.divf %16, %17 : vector<2x16xf32>
    %19 = vector.shape_cast %18 : vector<2x16xf32> to vector<2x16x1xf32>
    %20 = vector.broadcast %19 : vector<2x16x1xf32> to vector<2x16x256xf32>
    %21 = arith.mulf %0, %20 : vector<2x16x256xf32>
    %c0_11 = arith.constant 0 : index
    %c0_12 = arith.constant 0 : index
    %c0_13 = arith.constant 0 : index
    %22 = vector.load %arg4[%c0_11, %c0_12, %c0_13] : memref<2x16x256xf32, #tpu.memory_space<vmem>>, vector<2x16x256xf32>
    tpu.vector_store %arg4[%c0_11, %c0_12, %c0_13], %21 {strides = array<i32>} : memref<2x16x256xf32, #tpu.memory_space<vmem>>, vector<2x16x256xf32>,
    return
  }
  func.func @transform_0(%arg0: i32) -> (i32, i32, i32) {
    %c0_i32 = arith.constant 0 : i32
    %c0_i32_0 = arith.constant 0 : i32
    %c0_i32_1 = arith.constant 0 : i32
    return %arg0, %c0_i32, %c0_i32_0 : i32, i32, i32
  }
  func.func @transform_1(%arg0: i32) -> (i32, i32) {
    %c0_i32 = arith.constant 0 : i32
    %c0_i32_0 = arith.constant 0 : i32
    %c0_i32_1 = arith.constant 0 : i32
    return %c0_i32, %c0_i32_0 : i32, i32
  }
  func.func @transform_2(%arg0: i32) -> (i32, i32) {
    %c0_i32 = arith.constant 0 : i32
    %c0_i32_0 = arith.constant 0 : i32
    %c0_i32_1 = arith.constant 0 : i32
    return %c0_i32, %c0_i32_0 : i32, i32
  }
  func.func @transform_3(%arg0: i32) -> (i32, i32, i32) {
    %c0_i32 = arith.constant 0 : i32
    %c0_i32_0 = arith.constant 0 : i32
    %c0_i32_1 = arith.constant 0 : i32
    return %arg0, %c0_i32, %c0_i32_0 : i32, i32, i32
  }
}

</mosaic_0001>

<bundles_post_ra>
// kernel: tpu_custom_call.1
= control target key start
LH: loop header
LB: loop body
LE: loop exit
PB: predicated region body
PF: predicated region fallthrough
CT: control target
= control target key end

     0   :  { %8 = vsyncpa [#allocation3], 0  ;;  %s463_s0 = inlined_call_operand.hbm [shape: f32[2,16,256], index: 0, kind: input, shape index: {}]   ;;  %s464_s1 = inlined_call_operand.vmem [shape: f32[16,4], index: 1, kind: input, shape index: {}]   ;;  %s465_s2 = inlined_call_operand.vmem [shape: f32[4,16], index: 2, kind: input, shape index: {}]   ;;  %s466_s3 = inlined_call_operand.hbm [shape: f32[2,16,256], index: 3, kind: output, shape index: {}]  }
   0x1   :  { %9 = vsyncpa [#allocation4], 0  ;;  %s384_s12 = smov [#allocation2]  }
   0x2   :  { %s15_s13 = sshll.u32 %s384_s12, 4  ;;  %s16_s13 = int_to_ptr.vmem [resolvable:$true] %s15_s13 }
   0x3   :  { %s348_s14 = scalar_lea.vmem %s16_s13, 1024  ;;  %p353_p1 = scmp.lt.s32.totalorder %s16_s13, %s16_s13 }
   0x4   :  { %p349_p0 = scmp.ne.s32.totalorder %s16_s13, %s348_s14  ;;  %p354_p2 = scmp.lt.s32.totalorder %s348_s14, %s348_s14 }
   0x6   :  { %p355_p3 = por %p354_p2, %p353_p1 }
   0x8   :  { %p356_p4 = pnand %p355_p3, %p349_p0 }
   0xa   :  { %359 = shalt.err (!%p356_p4)
}
   0xb   :  { %s385_s15 = smov 256   ;;  %s386_s16 = smov 16  }
   0xc   :  { %21 = dma.hbm_to_vmem [thread:$0]  %s463_s0, 1024, %s16_s13, [#allocation3], %s385_s15, %s385_s15, %s386_s16  }
   0xd   :  { %380 = dma.done.wait [#allocation3], 1024  }
   0xe   :  { %381 = vsyncadd [#allocation3], 4294966272  ;;  %v416_v0 = vld [vmem:[#allocation2 + $0x20] sm:$0xff]  ;;  %v418_v1 = vld [vmem:[#allocation2 + $0x28] sm:$0xff]  ;;  %v387_v12 = vmov 0.0   ;;  %vm388_vm0 = vmmov 0   ;;  %v60_v15 = vlaneseq }
   0xf   :  { %v420_v2 = vld [vmem:[#allocation2] sm:$0xff]  ;;  %v43_v3 = vadd.f32 %v418_v1, %v416_v0  ;;  %v424_v4 = vld [vmem:[#allocation2 + $0x8] sm:$0xff]  ;;  %v426_v5 = vld [vmem:[#allocation2 + $0x30] sm:$0xff]  ;;  %314 = vmatprep.subr.mxu0 %v387_v12  ;;  %321 = vmatprep.subr.mxu1 %v387_v12  ;;  %vm71_vm1 = vcmask 130112   ;;  %vm82_vm2 = vcmask 1041409   ;;  %vm84_vm3 = vcmask 130048  }
  0x10   :  { %v428_v6 = vld [vmem:[#allocation2 + $0x38] sm:$0xff]  ;;  %v37_v7 = vadd.f32 %v424_v4, %v420_v2  ;;  %v432_v8 = vld [vmem:[#allocation2 + $0x10] sm:$0xff]  ;;  %v55_v13 = vld [vmem:[%s464_s1 + $0x8] sm:$0xff]  ;;  %318 = vmatprep.mubr.msk.f32.mxu0 %vm388_vm0, %v387_v12  ;;  %323 = vmatprep.mubr.msk.f32.mxu1 %vm388_vm0, %v387_v12  ;;  %v61_v16 = vand.u32 127, %v60_v15  ;;  %v63_v17 = vshrl.u32 %v60_v15, 7  ;;  %vm169_vm4 = vcmask 1043456  }
  0x11   :  { %v434_v9 = vld [vmem:[#allocation2 + $0x18] sm:$0xff]  ;;  %44 = vadd.xlane.f32.xlu1 %v43_v3  ;;  %v46_v10 = vadd.f32 %v428_v6, %v426_v5  ;;  %v54_v14 = vld [vmem:[%s464_s1] sm:$0xff]  ;;  %315 = vmatpush3.msra.mxu0 %v55_v13  ;;  %vm165_vm5 = vcmask 31744  }
  0x12   :  { %38 = vadd.xlane.f32.xlu0 %v37_v7  ;;  %v40_v11 = vadd.f32 %v434_v9, %v432_v8  ;;  %316 = vmatprep.subr.mxu0 %v387_v12  ;;  %v66_v18 = vadd.s32 4294967288, %v61_v16  ;;  %v64_v21 = vsub.s32 %v61_v16, %v63_v17  ;;  %v164_v36 = vld [vmem:[%s465_s2] sm:$0xf]  ;;  %v251_v49 = vsub.s32 0, %v63_v17  ;;  %s389_s2 = smov [#allocation5]  }
  0x13   :  { %317 = vmatpush3.msra.mxu0 %v54_v14  ;;  %322 = vmatpush3.msk.msra.mxu1 %vm169_vm4, %v164_v36  ;;  %v262_v52 = vsub.s32 1, %v63_v17  ;;  %s292_s23 = sshll.u32 %s389_s2, 4  ;;  %s293_s23 = int_to_ptr.vmem [resolvable:$true] %s292_s23 }
  0x14   :  { %v69_v23 = vsub.s32 %v66_v18, %v63_v17  ;;  %s360_s24 = scalar_lea.vmem %s293_s23, 1024  ;;  %p365_p6 = scmp.lt.s32.totalorder %s293_s23, %s293_s23 }
  0x15   :  { %47 = vadd.xlane.f32.xlu1 %v46_v10  ;;  %p361_p5 = scmp.ne.s32.totalorder %s293_s23, %s360_s24  ;;  %p366_p7 = scmp.lt.s32.totalorder %s360_s24, %s360_s24 }
  0x16   :  { %41 = vadd.xlane.f32.xlu0 %v40_v11 }
  0x17   :  { %p367_p8 = por %p366_p7, %p365_p6 }
  0x19   :  { %p368_p9 = pnand %p367_p8, %p361_p5 }
  0x9a   :  { %v45_v19 = vpop.xlane.xlu1 %44 }
  0x9b   :  { %v39_v20 = vpop.xlane.xlu0 %38  ;;  %v52_v22 = vmul.f32 0.00390625, %v45_v19 }
  0x9c   :  { %v50_v24 = vmul.f32 0.00390625, %v39_v20 }
  0x9d   :  { %v76_v29 = vrot.slane %v52_v22, %v64_v21 }
  0x9e   :  { %v48_v25 = vpop.xlane.xlu1 %47  ;;  %v65_v31 = vrot.slane %v50_v24, %v64_v21 }
  0x9f   :  { %v53_v26 = vmul.f32 0.00390625, %v48_v25  ;;  %v42_v27 = vpop.xlane.xlu0 %41 }
  0xa0   :  { %v51_v28 = vmul.f32 0.00390625, %v42_v27 }
  0xa1   :  { %v80_v30 = vrot.slane %v53_v26, %v69_v23 }
  0xa2   :  { %v70_v32 = vrot.slane %v51_v28, %v69_v23 }
  0xa3   :  { %v81_v33 = vsel %vm71_vm1, %v80_v30, %v76_v29 }
  0xa4   :  { %v72_v34 = vsel %vm71_vm1, %v70_v32, %v65_v31 }
  0xa5   :  { %v83_v35 = vsel %vm82_vm2, %v81_v33, %v72_v34 }
  0xa6   :  { %319 = vmatmul.mubr.msk.f32.vlgmr.msra.gmra.mxu0 %vm84_vm3, %v83_v35 }
 0x166   :  { %v153_v37 = vpop.f32.mrf.mxu0 }
 0x167   :  { %v305_v38 = vmul.f32 -1.442695, %v153_v37 }
 0x168   :  { %v320_v39 = vpop.f32.mrf.mxu0 }
 0x169   :  { %332 = vpow2.f32 %v305_v38 }
 0x176   :  { %v333_v40 = vpop.eup %332 }
 0x177   :  { %v160_v41 = vadd.f32 1.0, %v333_v40 }
 0x179   :  { %334 = vrcp.f32 %v160_v41 }
 0x186   :  { %v335_v42 = vpop.eup %334 }
 0x187   :  { %v163_v43 = vmul.f32 %v335_v42, %v153_v37 }
 0x189   :  { %324 = vmatmul.mubr.msk.f32.vlgmr.msra.gmra.mxu1 %vm165_vm5, %v163_v43 }
 0x249   :  { %v239_v44 = vpop.f32.mrf.mxu1 }
 0x24a   :  { %v308_v45 = vmul.f32 -1.442695, %v239_v44 }
 0x24b   :  { %v325_v46 = vpop.f32.mrf.mxu1 }
 0x24c   :  { %336 = vpow2.f32 %v308_v45 }
 0x259   :  { %v337_v47 = vpop.eup %336 }
 0x25a   :  { %v246_v48 = vadd.f32 1.0, %v337_v47 }
 0x25c   :  { %338 = vrcp.f32 %v246_v48 }
 0x269   :  { %v339_v50 = vpop.eup %338 }
 0x26a   :  { %v252_v51 = vrot.slane %v339_v50, %v251_v49  ;;  %v263_v53 = vrot.slane %v339_v50, %v262_v52 }
 0x26c   :  { %258 = vbcast.lane.b32.xlu1 %v252_v51, 264  ;;  %254 = vbcast.lane.b32.xlu0 %v252_v51, 256 }
 0x270   :  { %265 = vbcast.lane.b32.xlu1 %v263_v53, 256 }
 0x274   :  { %269 = vbcast.lane.b32.xlu1 %v263_v53, 264 }
 0x2de   :  { %v259_v54 = vpop.permute.xlu1 %258  ;;  %v255_v55 = vpop.permute.xlu0 %254 }
 0x2df   :  { %v273_v56 = vmul.f32 %v259_v54, %v432_v8  ;;  %v274_v57 = vmul.f32 %v259_v54, %v434_v9  ;;  %v271_v58 = vmul.f32 %v255_v55, %v420_v2  ;;  %v272_v59 = vmul.f32 %v255_v55, %v424_v4 }
 0x2e1   :  { %281 = vst [vmem:[#allocation5 + $0x10] sm:$0xff] %v273_v56  ;;  %282 = vst [vmem:[#allocation5 + $0x18] sm:$0xff] %v274_v57 }
 0x2e2   :  { %279 = vst [vmem:[#allocation5] sm:$0xff] %v271_v58  ;;  %280 = vst [vmem:[#allocation5 + $0x8] sm:$0xff] %v272_v59  ;;  %v266_v60 = vpop.permute.xlu1 %265 }
 0x2e3   :  { %v275_v61 = vmul.f32 %v266_v60, %v416_v0  ;;  %v276_v62 = vmul.f32 %v266_v60, %v418_v1 }
 0x2e5   :  { %283 = vst [vmem:[#allocation5 + $0x20] sm:$0xff] %v275_v61  ;;  %284 = vst [vmem:[#allocation5 + $0x28] sm:$0xff] %v276_v62 }
 0x2e6   :  { %v270_v63 = vpop.permute.xlu1 %269 }
 0x2e7   :  { %v277_v3 = vmul.f32 %v270_v63, %v426_v5  ;;  %v278_v2 = vmul.f32 %v270_v63, %v428_v6 }
 0x2e9   :  { %285 = vst [vmem:[#allocation5 + $0x30] sm:$0xff] %v277_v3  ;;  %286 = vst [vmem:[#allocation5 + $0x38] sm:$0xff] %v278_v2 }
 0x2ea   :  { %371 = shalt.err (!%p368_p9)
}
 0x2eb   :  { %298 = dma.vmem_to_hbm [thread:$0]  %s293_s23, 1024, %s466_s3, [#allocation4], %s385_s15, %s385_s15, %s386_s16  }
 0x2ec   :  { %382 = dma.done.wait [#allocation4], 1024  }
 0x2ed   :  { %383 = vsyncadd [#allocation4], 4294966272 }
 0x2ee   :  { %302 = vsyncpa [#allocation3], 1 }
 0x2ef   :  { %303 = vsyncpa [#allocation4], 1 }

</bundles_post_ra>
